<compile_context>
chip_gen: v5e
topology: v5e:2x2
jax: 0.10.0
libtpu: 0.0.40
codegen_flags: <defaults>
</compile_context>

<pallas_src>
import jax
import jax.numpy as jnp
from jax import lax
from jax.experimental import pallas as pl
from jax.experimental.pallas import tpu as pltpu

_LANES = 128
_TM_CAP = 4096    # max sublanes per input block (2 MiB fp32 / 1 MiB bf16)
_CHUNK = 512      # rows per in-register chunk of the fused hot loop


def _round_up(x, m):
    return ((x + m - 1) // m) * m


def _build_kernel(*, S, nm, TM, CH, n_valid, ragged):
    """Soft-IoU accumulation kernel for a fixed (static) tiling."""
    n_chunks = TM // CH
    tile_elems = TM * _LANES
    chunk_elems = CH * _LANES

    def kernel(pred_ref, target_ref, inter_ref, sum_ref):
        m = pl.program_id(1)               # reduction step within this job

        @pl.when(m == 0)
        def _():
            inter_ref[...] = jnp.zeros_like(inter_ref)
            sum_ref[...] = jnp.zeros_like(sum_ref)

        if ragged:
            if S == 1:
                tile = m
            else:
                j = pl.program_id(0)
                tile = (j % S) * nm + m    # logical tile index along N
            # Hoisted once per tile: local (row, lane) element offsets.
            local_idx = (
                lax.broadcasted_iota(jnp.int32, (CH, _LANES), 0) * _LANES
                + lax.broadcasted_iota(jnp.int32, (CH, _LANES), 1))

        def do_tile(masked):
            def body(c, carry):
                inter_l, sum_l = carry
                row0 = pl.multiple_of(c * CH, CH)
                x = pred_ref[0, pl.ds(row0, CH), :].astype(jnp.float32)
                t = target_ref[0, pl.ds(row0, CH), :].astype(jnp.float32)
                # sigmoid(x) = 0.5*(1 + tanh(x/2)): EUP transcendental, keeps
                # the precise-f32 divide off the VALU.
                p = 0.5 + 0.5 * jnp.tanh(0.5 * x)
                if masked:
                    base = tile * tile_elems + c * chunk_elems
                    valid = (local_idx + base) < n_valid
                    p = jnp.where(valid, p, 0.0)
                    t = jnp.where(valid, t, 0.0)
                inter_l = inter_l + jnp.sum(p * t, axis=0, keepdims=True)
                sum_l = sum_l + jnp.sum(p + t, axis=0, keepdims=True)
                return inter_l, sum_l

            zeros = jnp.zeros((1, _LANES), jnp.float32)
            inter_l, sum_l = lax.fori_loop(0, n_chunks, body, (zeros, zeros),
                                           unroll=True)
            inter_ref[0] += inter_l
            sum_ref[0] += sum_l

        if not ragged:
            do_tile(False)
        else:
            tile_is_full = (tile + 1) * tile_elems <= n_valid

            @pl.when(tile_is_full)
            def _():
                do_tile(False)

            @pl.when(jnp.logical_not(tile_is_full))
            def _():
                do_tile(True)

    return kernel


def soft_iou_loss(pred, target):
    """Pallas implementation of SoftLoULoss.forward(pred, target)."""
    assert pred.shape == target.shape
    B = pred.shape[0]
    N = 1
    for d in pred.shape[1:]:
        N *= d

    # ---- lay the flattened C*H*W axis out as (rows, 128 lanes) -------------
    p2 = pred.reshape(B, N)
    t2 = target.reshape(B, N)
    if N % _LANES != 0:
        # Rare path: pad only to the next lane multiple.  The in-kernel mask
        # (idx < N) keeps the padded elements out of both sums, so plain
        # zero-padding is safe.
        # TODO(synk): a fully pad-free path for N % 128 != 0 would need a 1-D
        # block layout; not worth it for typical image tensors.
        n_arr = _round_up(N, _LANES)
        p2 = jnp.pad(p2, ((0, 0), (0, n_arr - N)))
        t2 = jnp.pad(t2, ((0, 0), (0, n_arr - N)))
    else:
        n_arr = N
    m_arr = n_arr // _LANES
    p3 = p2.reshape(B, m_arr, _LANES)            # free reshape (row-major)
    t3 = t2.reshape(B, m_arr, _LANES)

    # ---- tiling -------------------------------------------------------------
    itemsize = min(pred.dtype.itemsize, target.dtype.itemsize)
    align = max(8, 32 // max(itemsize, 1))       # packed sublane tile: 8/16/32

    # v7x with B == 1: split the reduction across two parallel jobs so both
    # TensorCores stream HBM.  For B >= 2 the batch axis already parallelises.
    S = 2 if (B == 1 and m_arr >= 2 * _CHUNK) else 1
    rows_per_split = pl.cdiv(m_arr, S)

    if rows_per_split >= _CHUNK:
        TM = min(_round_up(rows_per_split, _CHUNK), _TM_CAP)
        CH = _CHUNK
    else:
        TM = min(_round_up(rows_per_split, align), m_arr)   # full-dim block ok
        CH = TM
    nm = pl.cdiv(rows_per_split, TM)             # reduction steps per job
    J = B * S

    ragged = (S * nm * TM * _LANES) != N         # any tile sticks past N?
    n_real_tiles = pl.cdiv(m_arr, TM)

    def in_map(j, m):
        if S == 1:
            b, tile = j, m
        else:
            b, tile = j // S, (j % S) * nm + m
        if S * nm > n_real_tiles:
            # Clamp excess split tiles so the DMA never goes fully OOB; the
            # in-kernel mask (computed from the *logical* tile) zeroes them.
            tile = jnp.minimum(tile, n_real_tiles - 1)
        return (b, tile, 0)

    kernel = _build_kernel(S=S, nm=nm, TM=TM, CH=CH, n_valid=N, ragged=ragged)

    inter_l, sum_l = pl.pallas_call(
        kernel,
        out_shape=(
            jax.ShapeDtypeStruct((J, 1, _LANES), jnp.float32),
            jax.ShapeDtypeStruct((J, 1, _LANES), jnp.float32),
        ),
        grid_spec=pltpu.PrefetchScalarGridSpec(
            num_scalar_prefetch=0,
            grid=(J, nm),
            in_specs=[
                pl.BlockSpec((1, TM, _LANES), in_map),
                pl.BlockSpec((1, TM, _LANES), in_map),
            ],
            out_specs=[
                pl.BlockSpec((1, 1, _LANES), lambda j, m: (j, 0, 0)),
                pl.BlockSpec((1, 1, _LANES), lambda j, m: (j, 0, 0)),
            ],
        ),
        compiler_params=pltpu.CompilerParams(
            # Jobs shard across TensorCores; the reduction axis carries the
            # lane accumulators.  VMEM: 2 inputs x 2 bufs x <= 2 MiB = 8 MiB,
            # inside every chip's scoped default (incl. v7x) -> no
            # vmem_limit_bytes needed.
            dimension_semantics=("parallel", "arbitrary"),
        ),
    )(p3, t3)

    # ---- tiny finalize in plain JAX -----------------------------------------
    smooth = jnp.float32(1.0)
    inter = jnp.sum(inter_l.reshape(B, S * _LANES), axis=1)       # sum(p*t)
    both = jnp.sum(sum_l.reshape(B, S * _LANES), axis=1)          # sum(p)+sum(t)
    ratio = (inter + smooth) / (both - inter + smooth)
    return 1.0 - jnp.mean(ratio)


def _reference_loss(pred, target):
    # Pure-JAX mirror of the PyTorch forward, for verification.
    p = jax.nn.sigmoid(pred.astype(jnp.float32))
    t = target.astype(jnp.float32)
    axes = tuple(range(1, pred.ndim))
    smooth = 1.0
    inter = jnp.sum(p * t, axis=axes)
    ps = jnp.sum(p, axis=axes)
    ts = jnp.sum(t, axis=axes)
    loss = (inter + smooth) / (ps + ts - inter + smooth)
    return 1.0 - jnp.mean(loss)


if __name__ == "__main__":
    loss_fn = jax.jit(soft_iou_loss)

    # Primary case (matches the module's typical 4-D input).
    key = jax.random.PRNGKey(0)
    k1, k2 = jax.random.split(key)
    B, C, H, W = 2, 4, 16, 16
    pred = jax.random.normal(k1, (B, C, H, W), dtype=jnp.float32)
    target = (jax.random.uniform(k2, (B, C, H, W)) > 0.5).astype(jnp.float32)

    loss = jax.block_until_ready(loss_fn(pred, target))
    ref = jax.block_until_ready(_reference_loss(pred, target))
    assert abs(float(loss) - float(ref)) < 1e-4, (float(loss), float(ref))

    # Extra sanity shapes: bf16 + B==1 reduction split, the ragged
    # (N % 128 != 0) mask path, and multi-tile accumulation (nm > 1).
    extra_cases = [
        ((1, 8, 128, 128), jnp.bfloat16),   # S=2 split across TensorCores
        ((2, 3, 17, 19), jnp.float32),      # N % 128 != 0 -> pad + mask path
        ((2, 3, 512, 512), jnp.float32),    # TM=4096, nm=2, ragged last tile
    ]
    for i, (shape, dtype) in enumerate(extra_cases):
        ka, kb = jax.random.split(jax.random.PRNGKey(i + 1))
        pr = jax.random.normal(ka, shape, dtype=jnp.float32).astype(dtype)
        tg = (jax.random.uniform(kb, shape) > 0.5).astype(dtype)
        l = jax.block_until_ready(loss_fn(pr, tg))
        r = jax.block_until_ready(_reference_loss(pr, tg))
        assert abs(float(l) - float(r)) < 1e-3, (shape, float(l), float(r))

    print("KERNEL_OK")
</pallas_src>

<mosaic_0001>
module attributes {stable_mosaic.version = 11 : i64} {
  func.func @kernel(%arg0: i32, %arg1: i32, %arg2: memref<1x8x128xf32, #tpu.memory_space<vmem>>, %arg3: memref<1x8x128xf32, #tpu.memory_space<vmem>>, %arg4: memref<1x1x128xf32, #tpu.memory_space<vmem>>, %arg5: memref<1x1x128xf32, #tpu.memory_space<vmem>>) attributes {dimension_semantics = [#tpu.dimension_semantics<parallel>, #tpu.dimension_semantics<arbitrary>], iteration_bounds = array<i64: 2, 1>, scalar_prefetch = 0 : i64, scratch_operands = 0 : i64, tpu.core_type = #tpu.core_type<tc>, window_params = [{transform_indices = @transform_0, window_bounds = array<i64: 1, 8, 128>}, {transform_indices = @transform_1, window_bounds = array<i64: 1, 8, 128>}, {transform_indices = @transform_2, window_bounds = array<i64: 1, 1, 128>}, {transform_indices = @transform_3, window_bounds = array<i64: 1, 1, 128>}]} {
    %c0_i32 = arith.constant 0 : i32
    %0 = arith.cmpi eq, %arg1, %c0_i32 : i32
    %1 = arith.extui %0 : i1 to i32
    %c0_i32_0 = arith.constant 0 : i32
    %2 = arith.cmpi ne, %1, %c0_i32_0 : i32
    scf.if %2 {
      %cst_22 = arith.constant 0.000000e+00 : f32
      %39 = vector.broadcast %cst_22 : f32 to vector<1x1x128xf32>
      %c0_23 = arith.constant 0 : index
      %c0_24 = arith.constant 0 : index
      %c0_25 = arith.constant 0 : index
      %40 = vector.load %arg4[%c0_23, %c0_24, %c0_25] : memref<1x1x128xf32, #tpu.memory_space<vmem>>, vector<1x1x128xf32>
      tpu.vector_store %arg4[%c0_23, %c0_24, %c0_25], %39 {strides = array<i32>} : memref<1x1x128xf32, #tpu.memory_space<vmem>>, vector<1x1x128xf32>,
      %cst_26 = arith.constant 0.000000e+00 : f32
      %41 = vector.broadcast %cst_26 : f32 to vector<1x1x128xf32>
      %c0_27 = arith.constant 0 : index
      %c0_28 = arith.constant 0 : index
      %c0_29 = arith.constant 0 : index
      %42 = vector.load %arg5[%c0_27, %c0_28, %c0_29] : memref<1x1x128xf32, #tpu.memory_space<vmem>>, vector<1x1x128xf32>
      tpu.vector_store %arg5[%c0_27, %c0_28, %c0_29], %41 {strides = array<i32>} : memref<1x1x128xf32, #tpu.memory_space<vmem>>, vector<1x1x128xf32>,
    } else {
    }
    %cst = arith.constant 0.000000e+00 : f32
    %3 = vector.broadcast %cst : f32 to vector<1x128xf32>
    %c0_i32_1 = arith.constant 0 : i32
    %c8_i32 = arith.constant 8 : i32
    %4 = arith.muli %c0_i32_1, %c8_i32 : i32
    %5 = tpu.assume_multiple %4, 8 : i32
    %c0 = arith.constant 0 : index
    %6 = arith.index_cast %5 : i32 to index
    %c0_2 = arith.constant 0 : index
    %7 = vector.load %arg2[%c0, %6, %c0_2] : memref<1x8x128xf32, #tpu.memory_space<vmem>>, vector<1x8x128xf32>
    %8 = vector.shape_cast %7 : vector<1x8x128xf32> to vector<8x128xf32>
    %c0_3 = arith.constant 0 : index
    %9 = arith.index_cast %5 : i32 to index
    %c0_4 = arith.constant 0 : index
    %10 = vector.load %arg3[%c0_3, %9, %c0_4] : memref<1x8x128xf32, #tpu.memory_space<vmem>>, vector<1x8x128xf32>
    %11 = vector.shape_cast %10 : vector<1x8x128xf32> to vector<8x128xf32>
    %cst_5 = arith.constant 5.000000e-01 : f32
    %12 = vector.broadcast %cst_5 : f32 to vector<8x128xf32>
    %13 = arith.mulf %12, %8 : vector<8x128xf32>
    %14 = math.tanh %13 : vector<8x128xf32>
    %cst_6 = arith.constant 5.000000e-01 : f32
    %15 = vector.broadcast %cst_6 : f32 to vector<8x128xf32>
    %16 = arith.mulf %15, %14 : vector<8x128xf32>
    %cst_7 = arith.constant 5.000000e-01 : f32
    %17 = vector.broadcast %cst_7 : f32 to vector<8x128xf32>
    %18 = arith.addf %17, %16 : vector<8x128xf32>
    %19 = arith.mulf %18, %11 : vector<8x128xf32>
    %cst_8 = arith.constant dense<0.000000e+00> : vector<128xf32>
    %20 = vector.multi_reduction <add>, %19, %cst_8 [0] : vector<8x128xf32> to vector<128xf32>
    %21 = vector.shape_cast %20 : vector<128xf32> to vector<1x128xf32>
    %22 = arith.addf %3, %21 : vector<1x128xf32>
    %23 = arith.addf %18, %11 : vector<8x128xf32>
    %cst_9 = arith.constant dense<0.000000e+00> : vector<128xf32>
    %24 = vector.multi_reduction <add>, %23, %cst_9 [0] : vector<8x128xf32> to vector<128xf32>
    %25 = vector.shape_cast %24 : vector<128xf32> to vector<1x128xf32>
    %26 = arith.addf %3, %25 : vector<1x128xf32>
    %c1_i32 = arith.constant 1 : i32
    %c0_10 = arith.constant 0 : index
    %c0_11 = arith.constant 0 : index
    %c0_12 = arith.constant 0 : index
    %27 = vector.load %arg4[%c0_10, %c0_11, %c0_12] : memref<1x1x128xf32, #tpu.memory_space<vmem>>, vector<1x1x128xf32>
    %28 = vector.shape_cast %27 : vector<1x1x128xf32> to vector<1x128xf32>
    %29 = arith.addf %28, %22 : vector<1x128xf32>
    %c0_13 = arith.constant 0 : index
    %c0_14 = arith.constant 0 : index
    %c0_15 = arith.constant 0 : index
    %30 = vector.load %arg4[%c0_13, %c0_14, %c0_15] : memref<1x1x128xf32, #tpu.memory_space<vmem>>, vector<1x1x128xf32>
    %31 = vector.shape_cast %30 : vector<1x1x128xf32> to vector<1x128xf32>
    %32 = vector.shape_cast %29 : vector<1x128xf32> to vector<1x1x128xf32>
    tpu.vector_store %arg4[%c0_13, %c0_14, %c0_15], %32 {strides = array<i32>} : memref<1x1x128xf32, #tpu.memory_space<vmem>>, vector<1x1x128xf32>,
    %c0_16 = arith.constant 0 : index
    %c0_17 = arith.constant 0 : index
    %c0_18 = arith.constant 0 : index
    %33 = vector.load %arg5[%c0_16, %c0_17, %c0_18] : memref<1x1x128xf32, #tpu.memory_space<vmem>>, vector<1x1x128xf32>
    %34 = vector.shape_cast %33 : vector<1x1x128xf32> to vector<1x128xf32>
    %35 = arith.addf %34, %26 : vector<1x128xf32>
    %c0_19 = arith.constant 0 : index
    %c0_20 = arith.constant 0 : index
    %c0_21 = arith.constant 0 : index
    %36 = vector.load %arg5[%c0_19, %c0_20, %c0_21] : memref<1x1x128xf32, #tpu.memory_space<vmem>>, vector<1x1x128xf32>
    %37 = vector.shape_cast %36 : vector<1x1x128xf32> to vector<1x128xf32>
    %38 = vector.shape_cast %35 : vector<1x128xf32> to vector<1x1x128xf32>
    tpu.vector_store %arg5[%c0_19, %c0_20, %c0_21], %38 {strides = array<i32>} : memref<1x1x128xf32, #tpu.memory_space<vmem>>, vector<1x1x128xf32>,
    return
  }
  func.func @transform_0(%arg0: i32, %arg1: i32) -> (i32, i32, i32) {
    %c0_i32 = arith.constant 0 : i32
    %c0_i32_0 = arith.constant 0 : i32
    return %arg0, %arg1, %c0_i32 : i32, i32, i32
  }
  func.func @transform_1(%arg0: i32, %arg1: i32) -> (i32, i32, i32) {
    %c0_i32 = arith.constant 0 : i32
    %c0_i32_0 = arith.constant 0 : i32
    return %arg0, %arg1, %c0_i32 : i32, i32, i32
  }
  func.func @transform_2(%arg0: i32, %arg1: i32) -> (i32, i32, i32) {
    %c0_i32 = arith.constant 0 : i32
    %c0_i32_0 = arith.constant 0 : i32
    %c0_i32_1 = arith.constant 0 : i32
    return %arg0, %c0_i32, %c0_i32_0 : i32, i32, i32
  }
  func.func @transform_3(%arg0: i32, %arg1: i32) -> (i32, i32, i32) {
    %c0_i32 = arith.constant 0 : i32
    %c0_i32_0 = arith.constant 0 : i32
    %c0_i32_1 = arith.constant 0 : i32
    return %arg0, %c0_i32, %c0_i32_0 : i32, i32, i32
  }
}

</mosaic_0001>

<bundles_post_ra>
// kernel: soft_iou_loss.1
= control target key start
LH: loop header
LB: loop body
LE: loop exit
PB: predicated region body
PF: predicated region fallthrough
CT: control target
= control target key end

     0   :  { %s437_s12 = smov 0   ;;  %s439_s13 = smov 0   ;;  %s481_s0 = inlined_call_operand.vmem [shape: f32[2,8,128], index: 0, kind: input, shape index: {}]   ;;  %s482_s1 = inlined_call_operand.vmem [shape: f32[2,8,128], index: 1, kind: input, shape index: {}]   ;;  %s483_s2 = inlined_call_operand.vmem [shape: f32[2,1,128], index: 2, kind: output, shape index: {0}]   ;;  %s484_s3 = inlined_call_operand.vmem [shape: f32[2,1,128], index: 3, kind: output, shape index: {1}]  }
   0x1   :  { %s441_s14 = smov 0  }
   0x2 LB: > { %s26_s15 = sadd.s32 1, %s410_s13  ;;  %p360_p0 = scmp.ge.s32.totalorder %s414_s14, 1  ;;  %s414_s14 = sphi %s441_s14, %s14_s14   ;;  %s410_s13 = sphi %s439_s13, %s486_s13   ;;  %s406_s12 = sphi %s437_s12, %s485_s12  }
   0x3   : > { %p28_p1 = scmp.ge.s32.totalorder %s26_s15, 2  ;;  %p170_p2 = scmp.lt.s32.totalorder %s414_s14, 3 }
   0x5   : > { %s488_s15 = smov (%p28_p1, %s26_s15), 0  ;;  %p171_p3 = pnand %p360_p0, %p170_p2 }
   0x6   : > { %p204_p4 = scmp.lt.s32.totalorder (!%p171_p3), %s406_s12, 1 }
   0x7   : > { %174 = sbr.rel (%p171_p3) target bundleno = 47 (0x2f), region = 28 }
   0xc   : > { %s490_s12 = smov (!%p204_p4, %s406_s12), 1  ;;  %v416_v0 = vmov 0.0  }
   0xd   : > { %s361_s16 = sshll.u32 %s490_s12, 3  ;;  %s458_s19 = scalar_lea.vmem %s483_s2, %s490_s12 }
   0xe   : > { %s210_s22 = scalar_lea.vmem %s481_s0, %s361_s16  ;;  %228 = vst [vmem:[%s458_s19] sm:$0x1] %v416_v0  ;;  %s223_s25 = scalar_lea.vmem %s484_s3, %s490_s12 }
   0xf   : > { %v230_v1 = vld [vmem:[%s210_s22] sm:$0xff]  ;;  %229 = vst [vmem:[%s223_s25] sm:$0x1] %v416_v0  ;;  %s217_s28 = scalar_lea.vmem %s482_s1, %s361_s16 }
  0x10   : > { %v232_v2 = vmul.f32 0.5, %v230_v1  ;;  %v231_v5 = vld [vmem:[%s217_s28] sm:$0xff] }
  0x12   : > { %390 = vtanh.f32 %v232_v2 }
  0x15   : > { %v252_v19 = vld [vmem:[%s458_s19] sm:$0x1] }
  0x16   : > { %v255_v20 = vld [vmem:[%s223_s25] sm:$0x1] }
  0x18   : > { %v391_v3 = vpop.eup %390 }
  0x19   : > { %v234_v4 = vmul.f32 0.5, %v391_v3 }
  0x1b   : > { %v235_v6 = vadd.f32 0.5, %v234_v4 }
  0x1d   : > { %v236_v7 = vmul.f32 %v235_v6, %v231_v5  ;;  %v244_v8 = vadd.f32 %v235_v6, %v231_v5 }
  0x1f   : > { %v237_v9 = vrot.slane %v236_v7, 4  ;;  %v245_v10 = vrot.slane %v244_v8, 4 }
  0x21   : > { %v238_v11 = vadd.f32 %v237_v9, %v236_v7  ;;  %v246_v12 = vadd.f32 %v245_v10, %v244_v8 }
  0x23   : > { %v239_v13 = vrot.slane %v238_v11, 2  ;;  %v247_v14 = vrot.slane %v246_v12, 2 }
  0x25   : > { %v240_v15 = vadd.f32 %v239_v13, %v238_v11  ;;  %v248_v16 = vadd.f32 %v247_v14, %v246_v12 }
  0x27   : > { %v241_v17 = vrot.slane %v240_v15, 1  ;;  %v249_v18 = vrot.slane %v248_v16, 1 }
  0x29   : > { %v242_v21 = vadd.f32 %v241_v17, %v240_v15  ;;  %v250_v22 = vadd.f32 %v249_v18, %v248_v16 }
  0x2b   : > { %v253_v23 = vadd.f32 %v252_v19, %v242_v21  ;;  %v256_v24 = vadd.f32 %v255_v20, %v250_v22 }
  0x2d   : > { %254 = vst [vmem:[%s458_s19] sm:$0x1] %v253_v23 }
  0x2e   : > { %257 = vst [vmem:[%s223_s25] sm:$0x1] %v256_v24 }
  0x2f PF: > { %s14_s14 = sadd.s32 1, %s414_s14   ;;  %s485_s12 = smov %s410_s13 }
  0x30   : > { %p11_p5 = scmp.ge.s32.totalorder %s14_s14, 4   ;;  %s486_s13 = smov %s488_s15 }
  0x32   :  { %13 = sbr.rel (!%p11_p5) target bundleno = 2 (0x2), region = 77 }

</bundles_post_ra>
